<compile_context>
chip_gen: v7x
topology: tpu7x:2x2x1
jax: 0.10.0
libtpu: 0.0.40
codegen_flags: <defaults>
</compile_context>

<pallas_src>
import math

import jax
import jax.numpy as jnp
from jax import lax
from jax.experimental import pallas as pl
from jax.experimental.pallas import tpu as pltpu  # noqa: F401  (TPU backend in use)

# TODO(synk): dropout from the PyTorch module is omitted (inference/eval mode only).

_NN = (((1,), (0,)), ((), ()))  # A @ B (contract last dim of A with first of B)


def make_attention_kernel(inv_scale: float):
    def attn_kernel(dec_ref, enc_ref, w_ref, o_ref):
        B, S, E = dec_ref.shape
        BS = B * S

        # Flatten batch into rows and row-stack [dec; enc] in VMEM (no HBM round-trip).
        dec2d = dec_ref[...].reshape(BS, E)
        enc2d = enc_ref[...].reshape(BS, E)
        x = jnp.concatenate([dec2d, enc2d], axis=0).astype(jnp.bfloat16)      # (2BS, E)

        # Single fused q/k/v projection: [dec; enc] @ [W_key.T | W_value.T].
        # bf16 MXU operands, f32 accumulation.  (dec @ W_value.T rows are wasted
        # work but free on an MXU that is <1% utilized at these shapes.)
        qkv = lax.dot_general(x, w_ref[...], _NN,
                              preferred_element_type=jnp.float32)             # (2BS, 2E)
        q = qkv[:BS, :E].reshape(B, S, E)      # dec @ W_key.T
        k = qkv[BS:, :E].reshape(B, S, E)      # enc @ W_key.T
        v = qkv[BS:, E:].reshape(B, S, E)      # enc @ W_value.T

        # Scores (B, S, S): fold the 1/sqrt(E) scale into the smaller (S, S) tiles.
        s = jnp.einsum(
            "bqe,bke->bqk",
            q.astype(jnp.bfloat16), k.astype(jnp.bfloat16),
            preferred_element_type=jnp.float32,
        ) * inv_scale

        # Numerically stable softmax in f32 (v5e VPU/EUP have no bf16).
        # Approx reciprocal runs on the EUP slot (essentially free).
        m = jnp.max(s, axis=-1, keepdims=True)
        e = jnp.exp(s - m)
        p = e * pl.reciprocal(jnp.sum(e, axis=-1, keepdims=True), approx=True)

        # Output (B, S, E) = p @ v, bf16 MXU operands, f32 accumulation.
        out = jnp.einsum(
            "bqk,bke->bqe",
            p.astype(jnp.bfloat16), v.astype(jnp.bfloat16),
            preferred_element_type=jnp.float32,
        )
        o_ref[...] = out.astype(o_ref.dtype)

    return attn_kernel


def pallas_cross_attention(enc_input, dec_input, w_key, w_value):
    """enc_input, dec_input: (B, S, E); w_key, w_value: (E, E)."""
    B, S, E = dec_input.shape
    assert enc_input.shape == (B, S, E)
    # S must be a multiple of 8 (f32 sublane tile) so the in-VMEM [dec; enc] row
    # split and the q/k slices stay tile-aligned (no silent relayout copies).
    assert S % 8 == 0, "sequence length must be a multiple of 8"

    inv_scale = 1.0 / math.sqrt(E)

    # One-time weight prep in the wrapper:
    #  * fuse W_key.T and W_value.T into a single (E, 2E) slab -> one MXU matmul
    #    for q/k/v and a single weight DMA stream,
    #  * pre-cast to bf16 -> half the weight DMA bytes, no per-call VPU casts.
    w_fused = jnp.concatenate([w_key.T, w_value.T], axis=1).astype(jnp.bfloat16)

    # Single kernel invocation (no grid): all B batches are processed in one step,
    # eliminating per-grid-step overhead and merging DMAs.  Total VMEM footprint is
    # a few tens of KB — far under the default scoped VMEM limit on v5e/v6e/v7x.
    # (Re-budget / set vmem_limit_bytes if B, S or E grow substantially; v7x has
    # only 64 MiB physical VMEM per TensorCore.)
    return pl.pallas_call(
        make_attention_kernel(inv_scale),
        out_shape=jax.ShapeDtypeStruct((B, S, E), dec_input.dtype),
    )(dec_input, enc_input, w_fused)


def reference_attention(enc_input, dec_input, w_key, w_value):
    """Pure-JAX f32 reference for correctness checking."""
    E = dec_input.shape[-1]
    scale = math.sqrt(E)
    q = jnp.einsum("bse,fe->bsf", dec_input, w_key)
    k = jnp.einsum("bse,fe->bsf", enc_input, w_key)
    v = jnp.einsum("bse,fe->bsf", enc_input, w_value)
    q = q / scale
    s = jnp.einsum("bqe,bke->bqk", q, k)
    p = jax.nn.softmax(s, axis=-1)
    return jnp.einsum("bqk,bke->bqe", p, v)


if __name__ == "__main__":
    # Small, module-consistent shapes: batch=2, seq=8, embed=32
    B, S, E = 2, 8, 32

    key = jax.random.PRNGKey(0)
    k1, k2, k3, k4 = jax.random.split(key, 4)

    enc_input = jax.random.normal(k1, (B, S, E), dtype=jnp.float32)
    dec_input = jax.random.normal(k2, (B, S, E), dtype=jnp.float32)
    w_key = jax.random.normal(k3, (E, E), dtype=jnp.float32) * (1.0 / math.sqrt(E))
    w_value = jax.random.normal(k4, (E, E), dtype=jnp.float32) * (1.0 / math.sqrt(E))

    out = pallas_cross_attention(enc_input, dec_input, w_key, w_value)
    out = jax.block_until_ready(out)

    ref = reference_attention(enc_input, dec_input, w_key, w_value)
    assert out.shape == (B, S, E)
    # Tolerance loosened relative to a pure-f32 path: the kernel uses bf16 MXU
    # operands (f32 accumulation) and an approx EUP reciprocal in the softmax.
    assert jnp.allclose(out, ref, atol=1e-1, rtol=1e-1), "mismatch vs reference"

    print("KERNEL_OK")
</pallas_src>

<mosaic_0001>
module attributes {stable_mosaic.version = 11 : i64} {
  func.func @attn_kernel(%arg0: memref<2x8x32xf32, #tpu.memory_space<vmem>>, %arg1: memref<2x8x32xf32, #tpu.memory_space<vmem>>, %arg2: memref<32x64xbf16, #tpu.memory_space<vmem>>, %arg3: memref<2x8x32xf32, #tpu.memory_space<vmem>>) attributes {dimension_semantics = [], scalar_prefetch = 0 : i64, scratch_operands = 0 : i64, tpu.core_type = #tpu.core_type<tc>} {
    %c0 = arith.constant 0 : index
    %c0_0 = arith.constant 0 : index
    %c0_1 = arith.constant 0 : index
    %0 = vector.load %arg0[%c0, %c0_0, %c0_1] : memref<2x8x32xf32, #tpu.memory_space<vmem>>, vector<2x8x32xf32>
    %1 = vector.shape_cast %0 : vector<2x8x32xf32> to vector<16x32xf32>
    %c0_2 = arith.constant 0 : index
    %c0_3 = arith.constant 0 : index
    %c0_4 = arith.constant 0 : index
    %2 = vector.load %arg1[%c0_2, %c0_3, %c0_4] : memref<2x8x32xf32, #tpu.memory_space<vmem>>, vector<2x8x32xf32>
    %3 = vector.shape_cast %2 : vector<2x8x32xf32> to vector<16x32xf32>
    %4 = tpu.concatenate %1, %3 in 0 : vector<16x32xf32>, vector<16x32xf32> -> vector<32x32xf32>
    %5 = arith.truncf %4 : vector<32x32xf32> to vector<32x32xbf16>
    %c0_5 = arith.constant 0 : index
    %c0_6 = arith.constant 0 : index
    %6 = vector.load %arg2[%c0_5, %c0_6] : memref<32x64xbf16, #tpu.memory_space<vmem>>, vector<32x64xbf16>
    %cst = arith.constant dense<0.000000e+00> : vector<32x64xf32>
    %7 = tpu.matmul %5, %6, %cst {dimension_numbers = #tpu.dot_dimension_numbers<[1], [0], [0], [1], [0, 0, 1, 1], [], []>} : vector<32x32xbf16>, vector<32x64xbf16>, vector<32x64xf32> -> vector<32x64xf32>
    %8 = vector.extract_strided_slice %7 {offsets = [0, 0], sizes = [16, 32], strides = [1, 1]} : vector<32x64xf32> to vector<16x32xf32>
    %9 = vector.shape_cast %8 : vector<16x32xf32> to vector<2x8x32xf32>
    %10 = vector.extract_strided_slice %7 {offsets = [16, 0], sizes = [16, 32], strides = [1, 1]} : vector<32x64xf32> to vector<16x32xf32>
    %11 = vector.shape_cast %10 : vector<16x32xf32> to vector<2x8x32xf32>
    %12 = vector.extract_strided_slice %7 {offsets = [16, 32], sizes = [16, 32], strides = [1, 1]} : vector<32x64xf32> to vector<16x32xf32>
    %13 = vector.shape_cast %12 : vector<16x32xf32> to vector<2x8x32xf32>
    %14 = arith.truncf %9 : vector<2x8x32xf32> to vector<2x8x32xbf16>
    %15 = arith.truncf %11 : vector<2x8x32xf32> to vector<2x8x32xbf16>
    "tpu.trace_start"() <{level = 10 : i32, message = "bqe,bke->bqk"}> : () -> ()
    %cst_7 = arith.constant dense<0.000000e+00> : vector<2x8x8xf32>
    %16 = tpu.matmul %14, %15, %cst_7 {dimension_numbers = #tpu.dot_dimension_numbers<[2], [2], [1], [1], [0, 0, 0, 1, 1, 1], [0], [0]>} : vector<2x8x32xbf16>, vector<2x8x32xbf16>, vector<2x8x8xf32> -> vector<2x8x8xf32>
    "tpu.trace_stop"() : () -> ()
    %cst_8 = arith.constant 0.176776692 : f32
    %17 = vector.broadcast %cst_8 : f32 to vector<2x8x8xf32>
    %18 = arith.mulf %16, %17 : vector<2x8x8xf32>
    %cst_9 = arith.constant dense<0xFF800000> : vector<2x8xf32>
    %19 = vector.multi_reduction <maximumf>, %18, %cst_9 [2] : vector<2x8x8xf32> to vector<2x8xf32>
    %20 = vector.shape_cast %19 : vector<2x8xf32> to vector<2x8x1xf32>
    %21 = vector.broadcast %20 : vector<2x8x1xf32> to vector<2x8x8xf32>
    %22 = arith.subf %18, %21 : vector<2x8x8xf32>
    %23 = math.exp %22 : vector<2x8x8xf32>
    %cst_10 = arith.constant dense<0.000000e+00> : vector<2x8xf32>
    %24 = vector.multi_reduction <add>, %23, %cst_10 [2] : vector<2x8x8xf32> to vector<2x8xf32>
    %25 = vector.shape_cast %24 : vector<2x8xf32> to vector<2x8x1xf32>
    %26 = tpu.reciprocal %25 {approx = true} : vector<2x8x1xf32> -> vector<2x8x1xf32>
    %27 = vector.broadcast %26 : vector<2x8x1xf32> to vector<2x8x8xf32>
    %28 = arith.mulf %23, %27 : vector<2x8x8xf32>
    %29 = arith.truncf %28 : vector<2x8x8xf32> to vector<2x8x8xbf16>
    %30 = arith.truncf %13 : vector<2x8x32xf32> to vector<2x8x32xbf16>
    "tpu.trace_start"() <{level = 10 : i32, message = "bqk,bke->bqe"}> : () -> ()
    %cst_11 = arith.constant dense<0.000000e+00> : vector<2x8x32xf32>
    %31 = tpu.matmul %29, %30, %cst_11 {dimension_numbers = #tpu.dot_dimension_numbers<[2], [1], [1], [2], [0, 0, 0, 1, 1, 2], [0], [0]>} : vector<2x8x8xbf16>, vector<2x8x32xbf16>, vector<2x8x32xf32> -> vector<2x8x32xf32>
    "tpu.trace_stop"() : () -> ()
    %c0_12 = arith.constant 0 : index
    %c0_13 = arith.constant 0 : index
    %c0_14 = arith.constant 0 : index
    %32 = vector.load %arg3[%c0_12, %c0_13, %c0_14] : memref<2x8x32xf32, #tpu.memory_space<vmem>>, vector<2x8x32xf32>
    tpu.vector_store %arg3[%c0_12, %c0_13, %c0_14], %31 {strides = array<i32>} : memref<2x8x32xf32, #tpu.memory_space<vmem>>, vector<2x8x32xf32>,
    return
  }
}

</mosaic_0001>

<bundles_post_ra>
// kernel: tpu_custom_call.1
= control target key start
LH: loop header
LB: loop body
LE: loop exit
PB: predicated region body
PF: predicated region fallthrough
CT: control target
= control target key end

     0   :  { %8 = vsyncpa [#allocation3], 0  ;;  %s659_s0 = inlined_call_operand.hbm [shape: f32[2,8,32], index: 0, kind: input, shape index: {}]   ;;  %s660_s1 = inlined_call_operand.hbm [shape: f32[2,8,32], index: 1, kind: input, shape index: {}]   ;;  %s661_s2 = inlined_call_operand.hbm [shape: bf16[32,64], index: 2, kind: input, shape index: {}]   ;;  %s662_s3 = inlined_call_operand.hbm [shape: f32[2,8,32], index: 3, kind: output, shape index: {}]  }
   0x1   :  { %9 = vsyncpa [#allocation6], 0 }
   0x2   :  { %10 = vsyncpa [#allocation4], 0  ;;  %s544_s12 = smov [#allocation5]   ;;  %s545_s14 = smov [#allocation2]  }
   0x3   :  { %s28_s13 = sshll.u32 %s544_s12, 4  ;;  %s16_s15 = sshll.u32 %s545_s14, 4  ;;  %s29_s13 = int_to_ptr.vmem [resolvable:$true] %s28_s13  ;;  %s575_s15 = int_to_ptr.vmem [resolvable:$true] %s16_s15 }
   0x4   :  { %s450_s18 = scalar_lea.hbm %s660_s1, 256 }
   0x5   :  { %p451_p0 = scmp.ne.s32.totalorder %s660_s1, %s450_s18  ;;  %p454_p1 = scmp.lt.u32.totalorder %s450_s18, %s660_s1 }
   0x7   :  { %p456_p2 = pnand %p454_p1, %p451_p0 }
   0x9   :  { %459 = shalt.err (!%p456_p2)
}
   0xa   :  { %s460_s23 = scalar_lea.vmem %s29_s13, 256  ;;  %p465_p4 = scmp.lt.s32.totalorder %s29_s13, %s29_s13 }
   0xb   :  { %p461_p3 = scmp.ne.s32.totalorder %s29_s13, %s460_s23  ;;  %p466_p5 = scmp.lt.s32.totalorder %s460_s23, %s460_s23 }
   0xd   :  { %p467_p6 = por %p466_p5, %p465_p4 }
   0xf   :  { %p468_p7 = pnand %p467_p6, %p461_p3 }
  0x11   :  { %471 = shalt.err (!%p468_p7)
}
  0x12   :  { %s546_s24 = smov 128   ;;  %s547_s25 = smov 8  }
  0x13   :  { %34 = dma.hbm_to_vmem [thread:$0]  %s660_s1, 256, %s29_s13, [#allocation6], %s546_s24, %s546_s24, %s547_s25  }
  0x14   :  { %s472_s30 = scalar_lea.hbm %s659_s0, 256 }
  0x15   :  { %p473_p8 = scmp.ne.s32.totalorder %s659_s0, %s472_s30  ;;  %p476_p9 = scmp.lt.u32.totalorder %s472_s30, %s659_s0 }
  0x17   :  { %p478_p10 = pnand %p476_p9, %p473_p8 }
  0x19   :  { %481 = shalt.err (!%p478_p10)
}
  0x1a   :  { %s482_s8 = scalar_lea.vmem %s575_s15, 256  ;;  %p487_p12 = scmp.lt.s32.totalorder %s575_s15, %s575_s15 }
  0x1b   :  { %p483_p11 = scmp.ne.s32.totalorder %s575_s15, %s482_s8  ;;  %p488_p13 = scmp.lt.s32.totalorder %s482_s8, %s482_s8 }
  0x1d   :  { %p489_p0 = por %p488_p13, %p487_p12 }
  0x1f   :  { %p490_p1 = pnand %p489_p0, %p483_p11 }
  0x21   :  { %493 = shalt.err (!%p490_p1)
}
  0x22   :  { %22 = dma.hbm_to_vmem [thread:$0]  %s659_s0, 256, %s575_s15, [#allocation3], %s546_s24, %s546_s24, %s547_s25  }
  0x23   :  { %s548_s10 = smov [#allocation7]   ;;  %s494_s14 = scalar_lea.hbm %s661_s2, 256 }
  0x24   :  { %s40_s11 = sshll.u32 %s548_s10, 4  ;;  %p495_p2 = scmp.ne.s32.totalorder %s661_s2, %s494_s14  ;;  %s41_s11 = int_to_ptr.vmem [resolvable:$true] %s40_s11 }
  0x25   :  { %p498_p3 = scmp.lt.u32.totalorder %s494_s14, %s661_s2 }
  0x27   :  { %p500_p4 = pnand %p498_p3, %p495_p2 }
  0x29   :  { %503 = shalt.err (!%p500_p4)
}
  0x2a   :  { %s504_s20 = scalar_lea.vmem %s41_s11, 256  ;;  %p509_p6 = scmp.lt.s32.totalorder %s41_s11, %s41_s11 }
  0x2b   :  { %p505_p5 = scmp.ne.s32.totalorder %s41_s11, %s504_s20  ;;  %p510_p7 = scmp.lt.s32.totalorder %s504_s20, %s504_s20 }
  0x2d   :  { %p511_p8 = por %p510_p7, %p509_p6 }
  0x2f   :  { %p512_p9 = pnand %p511_p8, %p505_p5 }
  0x31   :  { %515 = shalt.err (!%p512_p9)
}
  0x32   :  { %s549_s0 = smov 64   ;;  %s550_s15 = smov 4  }
  0x33   :  { %46 = dma.hbm_to_vmem [thread:$0]  %s661_s2, 256, %s41_s11, [#allocation6], %s549_s0, %s549_s0, %s550_s15  }
  0x34   :  { %538 = dma.done.wait [#allocation3], 256  }
  0x35   :  { %539 = vsyncadd [#allocation3], 4294967040 }
  0x36   :  { %540 = dma.done.wait [#allocation6], 512  }
  0x37   :  { %541 = vsyncadd [#allocation6], 4294966784  ;;  %v440_v0 = vld [vmem:[#allocation7] sm:$0xff]   ;;  %v441_v1 = vld [vmem:[#allocation7 + $0x8] sm:$0xff]   ;;  %vm79_vm0 = vcmask 261120   ;;  %v551_v8 = vmov 0.0  }
  0x38   :  { %397 = vmatprep.subr.bf16.mxu0 %v440_v0  ;;  %v57_v2 = vld [vmem:[#allocation2] sm:$0xff]  ;;  %v58_v3 = vld [vmem:[#allocation2 + $0x8] sm:$0xff]  ;;  %v59_v5 = vld [vmem:[#allocation5] sm:$0xff]  ;;  %405 = vmatprep.subr.bf16.mxu1 %v551_v8  ;;  %vm552_vm1 = vmmov 0   ;;  %vm233_vm2 = vcmask 64512   ;;  %s553_s2 = smov 96  }
  0x39   :  { %398 = vmatpush3.bf16.msra.mxu0 %v440_v0  ;;  %v61_v4 = vpack.c.bf16 %v58_v3, %v57_v2  ;;  %v60_v6 = vld [vmem:[#allocation5 + $0x8] sm:$0xff]  ;;  %407 = vmatprep.mubr.msk.bf16.mxu1 %vm552_vm1, %v551_v8  ;;  %vm264_vm3 = vcmask 1043456   ;;  %s554_s23 = smov [#allocation8]  }
  0x3a   :  { %399 = vmatprep.subr.bf16.mxu0 %v441_v1  ;;  %v62_v7 = vpack.c.bf16 %v60_v6, %v59_v5  ;;  %s364_s26 = sshll.u32 %s554_s23, 4  ;;  %s365_s26 = int_to_ptr.vmem [resolvable:$true] %s364_s26 }
  0x3b   :  { %401 = vmatprep.mubr.msk.bf16.mxu0 %vm79_vm0, %v61_v4  ;;  %s516_s27 = scalar_lea.vmem %s365_s26, 256  ;;  %p521_p11 = scmp.lt.s32.totalorder %s365_s26, %s365_s26 }
  0x3c   :  { %p517_p10 = scmp.ne.s32.totalorder %s365_s26, %s516_s27  ;;  %p522_p12 = scmp.lt.s32.totalorder %s516_s27, %s516_s27 }
  0x3d   :  { %400 = vmatpush3.bf16.msra.mxu0 %v441_v1 }
  0x3e   :  { %411 = vmatprep.subr.bf16.mxu0 %v551_v8  ;;  %p523_p13 = por %p522_p12, %p521_p11 }
  0x40   :  { %402 = vmatmul.mubr.msk.bf16.vlgmr.msra.gmra.mrb[0].mxu0 %vm79_vm0, %v62_v7  ;;  %p524_p0 = pnand %p523_p13, %p517_p10 }
  0x41   :  { %413 = vmatprep.mubr.msk.bf16.mxu0 %vm552_vm1, %v551_v8 }
 0x113   :  { %v403_v9 = vpop.f32.mrb[0].mxu0 }
 0x114   :  { %v137_v10 = vpack.c.bf16 %v403_v9, %v403_v9  ;;  %v120_v11 = vpop.f32.mrb[1].mxu0 }
 0x115   :  { %v404_v12 = vpop.f32.mrb[2].mxu0  ;;  %v135_v17 = vpack.c.bf16 %v120_v11, %v120_v11 }
 0x116   :  { %v138_v13 = vpack.c.bf16 %v404_v12, %v404_v12  ;;  %v123_v14 = vpop.f32.mrb[3].mxu0  ;;  %v143_v15 = vsel %vm79_vm0, %v137_v10, 0 }
 0x117   :  { %406 = vmatpush3.bf16.xpose.msra.mxu1 %v143_v15  ;;  %v136_v18 = vpack.c.bf16 %v123_v14, %v123_v14 }
 0x118   :  { %v189_v16 = vsel %vm79_vm0, %v138_v13, 0  ;;  %417 = vmatprep.subr.bf16.mxu1 %v551_v8 }
 0x119   :  { %412 = vmatpush3.bf16.xpose.msra.mxu0 %v189_v16 }
 0x11a   :  { %423 = vmatprep.subr.bf16.mxu0 %v551_v8 }
 0x11e   :  { %408 = vmatmul.mubr.msk.bf16.vlgmr.msra.gmra.mrb[0].mxu1 %vm79_vm0, %v135_v17 }
 0x11f   :  { %419 = vmatprep.mubr.msk.bf16.mxu1 %vm552_vm1, %v551_v8 }
 0x120   :  { %414 = vmatmul.mubr.msk.bf16.vlgmr.msra.gmra.mrb[4].mxu0 %vm79_vm0, %v136_v18 }
 0x121   :  { %425 = vmatprep.mubr.msk.bf16.mxu0 %vm552_vm1, %v551_v8 }
 0x1f1   :  { %v179_v19 = vpop.f32.mrb[0].mxu1 }
 0x1f2   :  { %v231_v20 = vmul.f32 0.17677669, %v179_v19  ;;  %v409_v21 = vpop.f32.mrb[1].mxu1 }
 0x1f3   :  { %v182_v22 = vpop.f32.mrb[2].mxu1  ;;  %v225_v23 = vpop.f32.mrb[4].mxu0 }
 0x1f4   :  { %v232_v24 = vmul.f32 0.17677669, %v225_v23  ;;  %v410_v25 = vpop.f32.mrb[3].mxu1  ;;  %v415_v26 = vpop.f32.mrb[5].mxu0  ;;  %v234_v27 = vsel %vm233_vm2, %v231_v20, -inf }
 0x1f5   :  { %235 = vmax.xlane.f32.xlu0 %v234_v27  ;;  %v228_v28 = vpop.f32.mrb[6].mxu0 }
 0x1f6   :  { %v416_v29 = vpop.f32.mrb[7].mxu0  ;;  %v237_v30 = vsel %vm233_vm2, %v232_v24, -inf }
 0x1f9   :  { %238 = vmax.xlane.f32.xlu0 %v237_v30 }
 0x20f   :  { %259 = vrot.lane.b32.xlu0 %v137_v10, %s553_s2 }
 0x282   :  { %v236_v31 = vpop.xlane.xlu0 %235 }
 0x283   :  { %v240_v32 = vsub.f32 %v231_v20, %v236_v31 }
 0x285   :  { %v242_v33 = vmul.f32 1.442695, %v240_v32 }
 0x286   :  { %v239_v34 = vpop.xlane.xlu0 %238 }
 0x287   :  { %442 = vpow2.f32 %v242_v33  ;;  %v241_v35 = vsub.f32 %v232_v24, %v239_v34 }
 0x289   :  { %v244_v36 = vmul.f32 1.442695, %v241_v35 }
 0x28a   :  { %v260_v37 = vpop.permute.xlu0 %259 }
 0x28b   :  { %444 = vpow2.f32 %v244_v36  ;;  %v266_v38 = vsel %vm264_vm3, %v260_v37, 0 }
 0x28c   :  { %418 = vmatpush3.bf16.msra.mxu1 %v266_v38 }
 0x291   :  { %v443_v39 = vpop.eup %442 }
 0x292   :  { %v246_v40 = vsel %vm233_vm2, %v443_v39, 0.0 }
 0x293   :  { %247 = vadd.xlane.f32.xlu1 %v246_v40 }
 0x295   :  { %v445_v41 = vpop.eup %444 }
 0x296   :  { %v249_v42 = vsel %vm233_vm2, %v445_v41, 0.0 }
 0x297   :  { %250 = vadd.xlane.f32.xlu1 %v249_v42 }
 0x2a8   :  { %309 = vrot.lane.b32.xlu1 %v138_v13, %s553_s2 }
 0x320   :  { %v248_v43 = vpop.xlane.xlu1 %247 }
 0x321   :  { %446 = vrcp.f32 %v248_v43 }
 0x324   :  { %v251_v44 = vpop.xlane.xlu1 %250 }
 0x325   :  { %448 = vrcp.f32 %v251_v44 }
 0x328   :  { %v310_v45 = vpop.permute.xlu1 %309 }
 0x329   :  { %v315_v46 = vsel %vm264_vm3, %v310_v45, 0 }
 0x32a   :  { %424 = vmatpush3.bf16.msra.mxu0 %v315_v46 }
 0x32b   :  { %v447_v47 = vpop.eup %446 }
 0x32c   :  { %v254_v48 = vmul.f32 %v447_v47, %v443_v39 }
 0x32e   :  { %v256_v49 = vpack.c.bf16 %v254_v48, %v254_v48 }
 0x32f   :  { %v449_v50 = vpop.eup %448 }
 0x330   :  { %v255_v51 = vmul.f32 %v449_v50, %v445_v41  ;;  %420 = vmatmul.mubr.msk.bf16.vlgmr.msra.gmra.mrb[4].mxu1 %vm233_vm2, %v256_v49 }
 0x332   :  { %v257_v52 = vpack.c.bf16 %v255_v51, %v255_v51 }
 0x334   :  { %426 = vmatmul.mubr.msk.bf16.vlgmr.msra.gmra.mrb[8].mxu0 %vm233_vm2, %v257_v52 }
 0x403   :  { %v302_v53 = vpop.f32.mrb[4].mxu1 }
 0x404   :  { %357 = vst.msk [vmem:[#allocation8] sm:$0xff] %vm79_vm0, %v302_v53  ;;  %v421_v54 = vpop.f32.mrb[5].mxu1 }
 0x405   :  { %v305_v55 = vpop.f32.mrb[6].mxu1 }
 0x406   :  { %v422_v56 = vpop.f32.mrb[7].mxu1 }
 0x407   :  { %v351_v57 = vpop.f32.mrb[8].mxu0 }
 0x408   :  { %358 = vst.msk [vmem:[#allocation8 + $0x8] sm:$0xff] %vm79_vm0, %v351_v57  ;;  %v427_v58 = vpop.f32.mrb[9].mxu0 }
 0x409   :  { %v354_v59 = vpop.f32.mrb[10].mxu0 }
 0x40a   :  { %527 = shalt.err (!%p524_p0)
}
 0x40b   :  { %s528_s30 = scalar_lea.hbm %s662_s3, 256 }
 0x40c   :  { %p529_p1 = scmp.ne.s32.totalorder %s662_s3, %s528_s30  ;;  %p532_p2 = scmp.lt.u32.totalorder %s528_s30, %s662_s3 }
 0x40e   :  { %p534_p3 = pnand %p532_p2, %p529_p1 }
 0x410   :  { %537 = shalt.err (!%p534_p3)
}
 0x411   :  { %370 = dma.vmem_to_hbm [thread:$0]  %s365_s26, 256, %s662_s3, [#allocation4], %s546_s24, %s546_s24, %s547_s25   ;;  %v428_v60 = vpop.f32.mrb[11].mxu0 }
 0x412   :  { %542 = dma.done.wait [#allocation4], 256  }
 0x413   :  { %543 = vsyncadd [#allocation4], 4294967040 }
 0x414   :  { %374 = vsyncpa [#allocation3], 1 }
 0x415   :  { %375 = vsyncpa [#allocation6], 1 }
 0x416   :  { %376 = vsyncpa [#allocation4], 1 }

</bundles_post_ra>
